<compile_context>
chip_gen: v6e
topology: v6e:2x2x1
jax: 0.10.0
libtpu: 0.0.40
codegen_flags: <defaults>
</compile_context>

<pallas_src>
import jax
import jax.numpy as jnp
from jax.experimental import pallas as pl
from jax.experimental.pallas import tpu as pltpu


def policy_kernel(bias_ref, w_ref, x_ref, o_ref):
    # bias_ref: SMEM (1,)            -- conv bias (scalar)
    # w_ref:    SMEM (C,)            -- conv weights (out_channels == 1)
    # x_ref:    VMEM (Bblk, C, THW)  -- batch-block x channels x spatial tile
    # o_ref:    VMEM (Bblk, THW)
    x = x_ref[...]                                   # (Bblk, C, THW) f32
    C = x.shape[1]
    # VPU broadcast-FMA over channels (unrolled; C is static & small).
    acc = x[:, 0, :] * w_ref[0]
    for c in range(1, C):
        acc = acc + x[:, c, :] * w_ref[c]
    o_ref[...] = (acc + bias_ref[0]).astype(o_ref.dtype)


def _choose_tiles(B, C, HW, itemsize=4, target_bytes=2 << 20):
    """Pick (batch_block, spatial_tile) so one grid step moves ~target_bytes."""
    # Spatial (lane) tile: a multiple of 128 that divides HW; full HW otherwise.
    thw = HW
    if HW % 128 == 0:
        # Shrink until 8 batch rows fit in the budget (keeps room for a
        # sublane-dense, multiple-of-8 batch block).
        while 8 * C * thw * itemsize > target_bytes and thw % 256 == 0:
            thw //= 2
    per_row = C * thw * itemsize
    want = max(1, min(B, target_bytes // max(per_row, 1)))
    if want >= B:
        return B, thw
    # Largest multiple of 8 that divides B and fits the budget (unmasked stores).
    d = (want // 8) * 8
    while d >= 8:
        if B % d == 0:
            return d, thw
        d -= 8
    # Fall back to the full batch per step (block == full dim is always legal).
    return B, thw


def policy_forward(x, weight, bias):
    """x: (B, C, H, W) float32; weight: (1, C, 1, 1); bias: (1,)."""
    B, C, H, W = x.shape
    HW = H * W
    x_flat = x.reshape(B, C, HW)          # contiguous view, no data movement
    w_vec = weight.reshape(C)             # (C,) scalar weights for SMEM

    bblk, thw = _choose_tiles(B, C, HW, itemsize=x.dtype.itemsize)
    grid = (B // bblk, HW // thw)

    itemsize = x.dtype.itemsize
    cost = pl.CostEstimate(
        flops=2 * B * C * HW,
        transcendentals=0,
        bytes_accessed=(B * C * HW + B * HW) * itemsize + (C + 1) * 4,
    )

    out_flat = pl.pallas_call(
        policy_kernel,
        out_shape=jax.ShapeDtypeStruct((B, HW), x.dtype),
        grid_spec=pltpu.PrefetchScalarGridSpec(
            num_scalar_prefetch=0,
            grid=grid,
            in_specs=[
                pl.BlockSpec(memory_space=pltpu.MemorySpace.SMEM),       # bias
                pl.BlockSpec(memory_space=pltpu.MemorySpace.SMEM),       # weight
                pl.BlockSpec((bblk, C, thw), lambda b, t: (b, 0, t)),    # x
            ],
            out_specs=pl.BlockSpec((bblk, thw), lambda b, t: (b, t)),
        ),
        compiler_params=pltpu.CompilerParams(
            dimension_semantics=("parallel", "parallel"),
        ),
        cost_estimate=cost,
    )(bias, w_vec, x_flat)

    return out_flat.reshape(B, 1, H, W)


if __name__ == "__main__":
    key = jax.random.PRNGKey(0)
    k_x, k_w, k_b = jax.random.split(key, 3)

    B, C, H, W = 2, 4, 16, 16
    x = jax.random.normal(k_x, (B, C, H, W), dtype=jnp.float32)

    # Deterministic synthetic parameters (Conv2d(in=C, out=1, kernel_size=1)).
    bound = 1.0 / jnp.sqrt(jnp.float32(C))  # matches PyTorch's uniform bound scale
    weight = jax.random.uniform(k_w, (1, C, 1, 1), jnp.float32, -bound, bound)
    bias = jax.random.uniform(k_b, (1,), jnp.float32, -bound, bound)

    out = policy_forward(x, weight, bias)
    out = jax.block_until_ready(out)

    # Reference check (plain JAX 1x1 conv).
    ref = jnp.einsum("bchw,oc->bohw", x, weight.reshape(1, C)) + bias.reshape(1, 1, 1, 1)
    assert out.shape == (B, 1, H, W)
    assert jnp.allclose(out, ref, atol=1e-5, rtol=1e-5)

    print("KERNEL_OK")
</pallas_src>

<mosaic_0001>
module attributes {stable_mosaic.version = 11 : i64} {
  func.func @policy_kernel(%arg0: i32, %arg1: i32, %arg2: memref<1xf32, #tpu.memory_space<smem>>, %arg3: memref<4xf32, #tpu.memory_space<smem>>, %arg4: memref<2x4x256xf32, #tpu.memory_space<vmem>>, %arg5: memref<2x256xf32, #tpu.memory_space<vmem>>) attributes {dimension_semantics = [#tpu.dimension_semantics<parallel>, #tpu.dimension_semantics<parallel>], iteration_bounds = array<i64: 1, 1>, scalar_prefetch = 0 : i64, scratch_operands = 0 : i64, tpu.core_type = #tpu.core_type<tc>, window_params = [{transform_indices = @transform_0, window_bounds = array<i64: 1>}, {transform_indices = @transform_1, window_bounds = array<i64: 4>}, {transform_indices = @transform_2, window_bounds = array<i64: 2, 4, 256>}, {transform_indices = @transform_3, window_bounds = array<i64: 2, 256>}]} {
    %c0 = arith.constant 0 : index
    %c0_0 = arith.constant 0 : index
    %c0_1 = arith.constant 0 : index
    %0 = vector.load %arg4[%c0, %c0_0, %c0_1] : memref<2x4x256xf32, #tpu.memory_space<vmem>>, vector<2x4x256xf32>
    %1 = vector.extract_strided_slice %0 {offsets = [0, 0, 0], sizes = [2, 1, 256], strides = [1, 1, 1]} : vector<2x4x256xf32> to vector<2x1x256xf32>
    %2 = vector.shape_cast %1 : vector<2x1x256xf32> to vector<2x256xf32>
    %c0_2 = arith.constant 0 : index
    %3 = memref.load %arg3[%c0_2] : memref<4xf32, #tpu.memory_space<smem>>
    %4 = vector.broadcast %3 : f32 to vector<2x256xf32>
    %5 = arith.mulf %2, %4 : vector<2x256xf32>
    %6 = vector.extract_strided_slice %0 {offsets = [0, 1, 0], sizes = [2, 1, 256], strides = [1, 1, 1]} : vector<2x4x256xf32> to vector<2x1x256xf32>
    %7 = vector.shape_cast %6 : vector<2x1x256xf32> to vector<2x256xf32>
    %c1 = arith.constant 1 : index
    %8 = memref.load %arg3[%c1] : memref<4xf32, #tpu.memory_space<smem>>
    %9 = vector.broadcast %8 : f32 to vector<2x256xf32>
    %10 = arith.mulf %7, %9 : vector<2x256xf32>
    %11 = arith.addf %5, %10 : vector<2x256xf32>
    %12 = vector.extract_strided_slice %0 {offsets = [0, 2, 0], sizes = [2, 1, 256], strides = [1, 1, 1]} : vector<2x4x256xf32> to vector<2x1x256xf32>
    %13 = vector.shape_cast %12 : vector<2x1x256xf32> to vector<2x256xf32>
    %c2 = arith.constant 2 : index
    %14 = memref.load %arg3[%c2] : memref<4xf32, #tpu.memory_space<smem>>
    %15 = vector.broadcast %14 : f32 to vector<2x256xf32>
    %16 = arith.mulf %13, %15 : vector<2x256xf32>
    %17 = arith.addf %11, %16 : vector<2x256xf32>
    %18 = vector.extract_strided_slice %0 {offsets = [0, 3, 0], sizes = [2, 1, 256], strides = [1, 1, 1]} : vector<2x4x256xf32> to vector<2x1x256xf32>
    %19 = vector.shape_cast %18 : vector<2x1x256xf32> to vector<2x256xf32>
    %c3 = arith.constant 3 : index
    %20 = memref.load %arg3[%c3] : memref<4xf32, #tpu.memory_space<smem>>
    %21 = vector.broadcast %20 : f32 to vector<2x256xf32>
    %22 = arith.mulf %19, %21 : vector<2x256xf32>
    %23 = arith.addf %17, %22 : vector<2x256xf32>
    %c0_3 = arith.constant 0 : index
    %24 = memref.load %arg2[%c0_3] : memref<1xf32, #tpu.memory_space<smem>>
    %25 = vector.broadcast %24 : f32 to vector<2x256xf32>
    %26 = arith.addf %23, %25 : vector<2x256xf32>
    %c0_4 = arith.constant 0 : index
    %c0_5 = arith.constant 0 : index
    %27 = vector.load %arg5[%c0_4, %c0_5] : memref<2x256xf32, #tpu.memory_space<vmem>>, vector<2x256xf32>
    tpu.vector_store %arg5[%c0_4, %c0_5], %26 {strides = array<i32>} : memref<2x256xf32, #tpu.memory_space<vmem>>, vector<2x256xf32>,
    return
  }
  func.func @transform_0(%arg0: i32, %arg1: i32) -> i32 {
    %c0_i32 = arith.constant 0 : i32
    %c0_i32_0 = arith.constant 0 : i32
    return %c0_i32 : i32
  }
  func.func @transform_1(%arg0: i32, %arg1: i32) -> i32 {
    %c0_i32 = arith.constant 0 : i32
    %c0_i32_0 = arith.constant 0 : i32
    return %c0_i32 : i32
  }
  func.func @transform_2(%arg0: i32, %arg1: i32) -> (i32, i32, i32) {
    %c0_i32 = arith.constant 0 : i32
    %c0_i32_0 = arith.constant 0 : i32
    return %arg0, %c0_i32, %arg1 : i32, i32, i32
  }
  func.func @transform_3(%arg0: i32, %arg1: i32) -> (i32, i32) {
    %c0_i32 = arith.constant 0 : i32
    return %arg0, %arg1 : i32, i32
  }
}

</mosaic_0001>

<bundles_post_ra>
// kernel: tpu_custom_call.1
= control target key start
LH: loop header
LB: loop body
LE: loop exit
PB: predicated region body
PF: predicated region fallthrough
CT: control target
= control target key end

     0   :  { %9 = vsyncpa [#allocation6], 0  ;;  %s253_s0 = inlined_call_operand.<no memory space> [shape: f32[1], index: 0, kind: input, shape index: {}]   ;;  %s254_s1 = inlined_call_operand.vmem [shape: f32[4], index: 1, kind: input, shape index: {}]   ;;  %s255_s2 = inlined_call_operand.hbm [shape: f32[2,4,256], index: 2, kind: input, shape index: {}]   ;;  %s256_s3 = inlined_call_operand.hbm [shape: f32[2,256], index: 3, kind: output, shape index: {}]  }
   0x1   :  { %10 = vsyncpa [#allocation4], 0 }
   0x2   :  { %11 = vsyncpa [#allocation5], 0  ;;  %s20_s14 = sshll.u32 %s254_s1, 4  ;;  %s21_s14 = int_to_ptr.vmem [resolvable:$true] %s20_s14 }
   0x3   :  { %s157_s15 = scalar_lea.vmem %s21_s14, 16  ;;  %p162_p1 = scmp.lt.s32.totalorder %s21_s14, %s21_s14 }
   0x4   :  { %p158_p0 = scmp.ne.s32.totalorder %s21_s14, %s157_s15  ;;  %p163_p2 = scmp.lt.s32.totalorder %s157_s15, %s157_s15 }
   0x6   :  { %p164_p3 = por %p163_p2, %p162_p1 }
   0x8   :  { %p165_p4 = pnand %p164_p3, %p158_p0 }
   0xa   :  { %168 = shalt.err (!%p165_p4)
}
   0xb   :  { %s215_s16 = smov [#allocation3]   ;;  %s216_s17 = smov [#allocation7]  }
   0xc   :  { %23 = dma.vmem_to_smem %s21_s14, 16, %s215_s16, [#allocation6]  }
   0xd   :  { %s29_s18 = sshll.u32 %s216_s17, 4  ;;  %s30_s18 = int_to_ptr.vmem [resolvable:$true] %s29_s18 }
   0xe   :  { %s177_s19 = scalar_lea.vmem %s30_s18, 256  ;;  %p182_p6 = scmp.lt.s32.totalorder %s30_s18, %s30_s18 }
   0xf   :  { %p178_p5 = scmp.ne.s32.totalorder %s30_s18, %s177_s19  ;;  %p183_p7 = scmp.lt.s32.totalorder %s177_s19, %s177_s19 }
  0x11   :  { %p184_p8 = por %p183_p7, %p182_p6 }
  0x13   :  { %p185_p9 = pnand %p184_p8, %p178_p5 }
  0x15   :  { %188 = shalt.err (!%p185_p9)
}
  0x16   :  { %s217_s1 = smov 128   ;;  %s218_s20 = smov 8  }
  0x17   :  { %35 = dma.hbm_to_vmem [thread:$0]  %s255_s2, 256, %s30_s18, [#allocation4], %s217_s1, %s217_s1, %s218_s20  }
  0x18   :  { %209 = dma.done.wait [#allocation6], 16  }
  0x19   :  { %210 = vsyncadd [#allocation6], 4294967280 }
  0x1a   :  { %211 = dma.done.wait [#allocation4], 256  }
  0x1b   :  { %212 = vsyncadd [#allocation4], 4294967040 }
  0x1c   :  { %42 = sfence }
  0x1d   :  { %s45_s23 = sld [smem:[#allocation3]]  ;;  %v43_v0 = vld [vmem:[#allocation7] sm:$0xff]  ;;  %v44_v1 = vld [vmem:[#allocation7 + $0x8] sm:$0xff]  ;;  %v219_v5 = vmov 1983009808   ;;  %v100_v7 = vlaneseq  ;;  %v92_v29 = vstv %s253_s0  ;;  %vm116_vm0 = vcmask 1041409  }
  0x1e   :  { %s142_s24 = sld [smem:[#allocation3 + $0x1]]  ;;  %v98_v6 = vunpack.c.l.s4 %v219_v5  ;;  %vm118_vm1 = vcmask 1043459   ;;  %vm120_vm2 = vcmask 1045509   ;;  %s220_s28 = smov [#allocation8]   ;;  %vm122_vm3 = vcmask 1047559  }
  0x1f   :  { %s145_s25 = sld [smem:[#allocation3 + $0x2]]  ;;  %v101_v22 = vshrl.u32 %v100_v7, 7  ;;  %s132_s29 = sshll.u32 %s220_s28, 4  ;;  %s133_s29 = int_to_ptr.vmem [resolvable:$true] %s132_s29 }
  0x20   :  { %s148_s26 = sld [smem:[#allocation3 + $0x3]]  ;;  %v99_v21 = vunpack.c.0.s8 %v98_v6  ;;  %s189_s0 = scalar_lea.vmem %s133_s29, 64 }
  0x21   :  { %p190_p10 = scmp.ne.s32.totalorder %s133_s29, %s189_s0  ;;  %p194_p11 = scmp.lt.s32.totalorder %s133_s29, %s133_s29 }
  0x22   :  { %v102_v32 = vsub.s32 %v99_v21, %v101_v22  ;;  %p195_p12 = scmp.lt.s32.totalorder %s189_s0, %s189_s0 }
  0x23   :  { %v46_v2 = vstv %s45_s23 }
  0x24   :  { %v47_v3 = vmul.f32 %v46_v2, %v43_v0  ;;  %v50_v4 = vstv %s142_s24  ;;  %v48_v8 = vmul.f32 %v46_v2, %v44_v1  ;;  %p196_p13 = por %p195_p12, %p194_p11 }
  0x25   :  { %v51_v9 = vmul.f32 %v50_v4, %v43_v0  ;;  %v52_v10 = vmul.f32 %v50_v4, %v44_v1  ;;  %v64_v11 = vstv %s145_s25 }
  0x26   :  { %v65_v12 = vmul.f32 %v64_v11, %v43_v0  ;;  %v66_v13 = vmul.f32 %v64_v11, %v44_v1  ;;  %v78_v14 = vstv %s148_s26  ;;  %p197_p0 = pnand %p196_p13, %p190_p10 }
  0x27   :  { %v143_v15 = vrot.slane %v51_v9, 9  ;;  %v144_v16 = vrot.slane %v52_v10, 9  ;;  %v79_v17 = vmul.f32 %v78_v14, %v43_v0  ;;  %v80_v18 = vmul.f32 %v78_v14, %v44_v1 }
  0x28   :  { %v146_v19 = vrot.slane %v65_v12, 10  ;;  %v147_v20 = vrot.slane %v66_v13, 10 }
  0x29   :  { %v61_v23 = vadd.f32 %v143_v15, %v47_v3  ;;  %v62_v24 = vadd.f32 %v144_v16, %v48_v8  ;;  %v149_v25 = vrot.slane %v79_v17, 11  ;;  %v150_v26 = vrot.slane %v80_v18, 11 }
  0x2b   :  { %v75_v27 = vadd.f32 %v146_v19, %v61_v23  ;;  %v76_v28 = vadd.f32 %v147_v20, %v62_v24 }
  0x2d   :  { %v89_v30 = vadd.f32 %v149_v25, %v75_v27  ;;  %v90_v31 = vadd.f32 %v150_v26, %v76_v28 }
  0x2f   :  { %v93_v33 = vadd.f32 %v92_v29, %v89_v30  ;;  %v94_v34 = vadd.f32 %v92_v29, %v90_v31 }
  0x31   :  { %v103_v35 = vrot.slane %v93_v33, %v102_v32  ;;  %v110_v36 = vrot.slane %v94_v34, %v102_v32 }
  0x33   :  { %v115_v37 = vrot.slane %v110_v36, 7 }
  0x35   :  { %v117_v38 = vsel %vm116_vm0, %v115_v37, %v103_v35 }
  0x36   :  { %v119_v39 = vsel %vm118_vm1, %v115_v37, %v117_v38 }
  0x37   :  { %v121_v40 = vsel %vm120_vm2, %v115_v37, %v119_v39 }
  0x38   :  { %v123_v41 = vsel %vm122_vm3, %v115_v37, %v121_v40 }
  0x39   :  { %125 = vst [vmem:[#allocation8] sm:$0xf] %v123_v41 }
  0x3a   :  { %200 = shalt.err (!%p197_p0)
}
  0x3b   :  { %135 = dma.vmem_to_hbm [thread:$0]  %s133_s29, 64, %s256_s3, [#allocation5]  }
  0x3c   :  { %213 = dma.done.wait [#allocation5], 64  }
  0x3d   :  { %214 = vsyncadd [#allocation5], 4294967232 }
  0x3e   :  { %139 = vsyncpa [#allocation4], 1 }
  0x3f   :  { %140 = vsyncpa [#allocation5], 1 }
  0x40   :  { %141 = vsyncpa [#allocation6], 1 }

</bundles_post_ra>
